<compile_context>
chip_gen: v6e
topology: v6e:2x2x1
jax: 0.10.0
libtpu: 0.0.40
codegen_flags: <defaults>
</compile_context>

<pallas_src>
import jax
import jax.numpy as jnp
from jax.experimental import pallas as pl
from jax.experimental.pallas import tpu as pltpu

_HIDDEN_DIMS = (256, 128, 64, 32, 1)


# ----------------------------- kernel ---------------------------------------


def mlp_kernel(x_ref,
               w1_ref, b1_ref,
               w2_ref, b2_ref,
               w3_ref, b3_ref,
               w4_ref, b4_ref,
               w5_ref, b5_ref,
               o_ref):
    """One batch-tile of the fused 5-layer MLP.

    x_ref  : (bt, input_size) f32   natural-layout activation tile
    wN_ref : (out, in)        bf16  PyTorch weight layout, MXU operand (layers 1-4)
    bN_ref : (out, 1)         f32   bias column, lane-broadcast
    w5_ref : (32, 1)          f32   head weight as a column (VPU operand)
    b5_ref : (1, 1)           f32
    o_ref  : (1, bt)          f32   lane-dense output row
    """
    xb = x_ref[...].astype(jnp.bfloat16)                        # (bt, in)

    # Layer 1: contract over the feature dim of both operands (trans-RHS matmul),
    # producing (256, bt) -> batch lands on the lane axis for everything below.
    h = jax.lax.dot_general(
        w1_ref[...], xb,
        dimension_numbers=(((1,), (1,)), ((), ())),
        preferred_element_type=jnp.float32) + b1_ref[...]
    h = jnp.maximum(h, 0.0)                                      # (256, bt) f32

    h = jnp.dot(w2_ref[...], h.astype(jnp.bfloat16),
                preferred_element_type=jnp.float32) + b2_ref[...]
    h = jnp.maximum(h, 0.0)                                      # (128, bt)

    h = jnp.dot(w3_ref[...], h.astype(jnp.bfloat16),
                preferred_element_type=jnp.float32) + b3_ref[...]
    h = jnp.maximum(h, 0.0)                                      # (64, bt)

    h = jnp.dot(w4_ref[...], h.astype(jnp.bfloat16),
                preferred_element_type=jnp.float32) + b4_ref[...]
    h = jnp.maximum(h, 0.0)                                      # (32, bt)

    # Final 32 -> 1 layer: f32 VPU multiply + sublane (XLU) reduction; avoids a
    # 1-row MXU matmul and produces a lane-dense (1, bt) row directly.
    out = jnp.sum(h * w5_ref[...], axis=0, keepdims=True) + b5_ref[...]
    o_ref[...] = out.astype(o_ref.dtype)


# --------------------------- tile selection ----------------------------------


def _round_up(n, m):
    return ((n + m - 1) // m) * m


def _vmem_budget_bytes():
    """Conservative per-kernel VMEM budget (v7x only has 64 MiB physical)."""
    try:
        return int(pltpu.get_tpu_info().vmem_capacity_bytes) // 4
    except Exception:
        return 16 * 1024 * 1024  # v5e scoped-VMEM default


def _tile_vmem_bytes(batch_tile, in_features):
    """Rough VMEM footprint for one pipelined batch tile."""
    # double-buffered x tile + out tile (f32)
    xio = 2 * batch_tile * in_features * 4 + 2 * batch_tile * 4
    # resident weights (bf16, double-buffered allocation) + biases (f32)
    dims = (in_features,) + _HIDDEN_DIMS
    wbytes = 2 * sum(dims[i] * dims[i + 1] for i in range(5)) * 2
    bbytes = 2 * sum(_HIDDEN_DIMS) * 4
    # live activations inside the body (f32 + bf16 copies), generous
    act = batch_tile * sum(_HIDDEN_DIMS) * (4 + 2)
    return xio + wbytes + bbytes + act


def _choose_batch_tile(batch, in_features):
    b128 = _round_up(max(batch, 1), 128)
    bt = 128
    for cand in (1024, 512, 256, 128):
        if cand <= b128:
            bt = cand
            break
    # keep >= 2 grid steps when the batch allows it (v7x: 2 TensorCores share
    # the "parallel" batch axis)
    if bt > 128 and b128 // bt < 2:
        bt //= 2
    # cap by VMEM (matters only for very large input_size, esp. v7x's 64 MiB)
    budget = _vmem_budget_bytes()
    while bt > 128 and _tile_vmem_bytes(bt, in_features) > budget:
        bt //= 2
    return bt


# ------------------------------ wrapper --------------------------------------


def _prepare_params(params):
    """PyTorch-layout params -> kernel operands.

    params: list of (W, b) with W:(out_features, in_features) f32, b:(out_features,) f32.
    """
    (w1, b1), (w2, b2), (w3, b3), (w4, b4), (w5, b5) = params
    flat = []
    for w, b in ((w1, b1), (w2, b2), (w3, b3), (w4, b4)):
        flat.append(w.astype(jnp.bfloat16))                  # MXU operand, cast once
        flat.append(b.reshape(-1, 1).astype(jnp.float32))    # (out, 1) bias column
    flat.append(w5.reshape(-1, 1).astype(jnp.float32))       # (32, 1) head weight (VPU, f32)
    flat.append(b5.reshape(1, 1).astype(jnp.float32))        # (1, 1)
    return flat


def chess_eval_forward(x, params, *, batch_tile=None):
    """x: (B, input_size) f32.  params: PyTorch-layout (W (out,in), b (out,)) pairs."""
    B, in_features = x.shape
    if batch_tile is None:
        batch_tile = _choose_batch_tile(B, in_features)
    assert batch_tile % 128 == 0

    b_pad = _round_up(B, batch_tile)
    if b_pad != B:
        x = jnp.pad(x, ((0, b_pad - B), (0, 0)))

    flat = _prepare_params(params)

    def resident_spec(arr):
        # Full-array block, constant index map -> fetched once, resident in VMEM.
        return pl.BlockSpec(arr.shape, lambda i: (0, 0))

    grid = (b_pad // batch_tile,)

    out = pl.pallas_call(
        mlp_kernel,
        out_shape=jax.ShapeDtypeStruct((1, b_pad), jnp.float32),
        grid_spec=pltpu.PrefetchScalarGridSpec(
            num_scalar_prefetch=0,
            grid=grid,
            in_specs=[pl.BlockSpec((batch_tile, in_features), lambda i: (i, 0))]
                     + [resident_spec(a) for a in flat],
            out_specs=pl.BlockSpec((1, batch_tile), lambda i: (0, i)),
        ),
        compiler_params=pltpu.CompilerParams(
            dimension_semantics=("parallel",),
        ),
    )(x, *flat)

    return out[0, :B].reshape(B, 1)


# ------------------------- init + reference ----------------------------------


def init_params(key, input_size):
    """Synthetic init matching nn.Linear defaults, in PyTorch (out, in) layout."""
    dims = [input_size] + list(_HIDDEN_DIMS)
    params = []
    for li in range(5):
        fan_in, fan_out = dims[li], dims[li + 1]
        key, kw, kb = jax.random.split(key, 3)
        bound = 1.0 / (fan_in ** 0.5)
        w = jax.random.uniform(kw, (fan_out, fan_in), jnp.float32, -bound, bound)
        b = jax.random.uniform(kb, (fan_out,), jnp.float32, -bound, bound)
        params.append((w, b))
    return params


def reference_forward(x, params, *, bf16_matmuls=False):
    """Pure-JAX reference.  bf16_matmuls=True mirrors the kernel's dtype handling
    (bf16 MXU operands for layers 1-4, f32 for the tiny head)."""
    h = x
    n = len(params)
    for idx, (w, b) in enumerate(params):
        lhs, rhs = h, w.T
        if bf16_matmuls and idx < n - 1:
            lhs = lhs.astype(jnp.bfloat16)
            rhs = rhs.astype(jnp.bfloat16)
        h = jnp.dot(lhs, rhs, preferred_element_type=jnp.float32) + b
        if idx < n - 1:
            h = jnp.maximum(h, 0.0)
    return h


# ------------------------------- main -----------------------------------------


if __name__ == "__main__":
    key = jax.random.PRNGKey(0)
    input_size = 64        # small synthetic chess-feature vector size
    batch = 256            # enough for lane-dense tiles + a 2-step grid

    key, kx = jax.random.split(key)
    x = jax.random.normal(kx, (batch, input_size), jnp.float32)
    params = init_params(key, input_size)

    out = chess_eval_forward(x, params)
    out = jax.block_until_ready(out)
    assert out.shape == (batch, 1)

    # Exact-semantics reference (bf16 operands on layers 1-4, f32 head).
    ref_mixed = reference_forward(x, params, bf16_matmuls=True)
    # Full-f32 reference (loose tolerance covers bf16 operand quantization).
    ref_f32 = reference_forward(x, params, bf16_matmuls=False)

    assert jnp.allclose(out, ref_mixed, atol=2e-3, rtol=2e-3), "mismatch vs mixed-precision reference"
    assert jnp.allclose(out, ref_f32, atol=1e-1, rtol=1e-1), "mismatch vs f32 reference"

    print("KERNEL_OK")
</pallas_src>

<mosaic_0001>
module attributes {stable_mosaic.version = 11 : i64} {
  func.func @mlp_kernel(%arg0: i32, %arg1: memref<128x64xf32, #tpu.memory_space<vmem>>, %arg2: memref<256x64xbf16, #tpu.memory_space<vmem>>, %arg3: memref<256x1xf32, #tpu.memory_space<vmem>>, %arg4: memref<128x256xbf16, #tpu.memory_space<vmem>>, %arg5: memref<128x1xf32, #tpu.memory_space<vmem>>, %arg6: memref<64x128xbf16, #tpu.memory_space<vmem>>, %arg7: memref<64x1xf32, #tpu.memory_space<vmem>>, %arg8: memref<32x64xbf16, #tpu.memory_space<vmem>>, %arg9: memref<32x1xf32, #tpu.memory_space<vmem>>, %arg10: memref<32x1xf32, #tpu.memory_space<vmem>>, %arg11: memref<1x1xf32, #tpu.memory_space<vmem>>, %arg12: memref<1x128xf32, #tpu.memory_space<vmem>>) attributes {dimension_semantics = [#tpu.dimension_semantics<parallel>], iteration_bounds = array<i64: 2>, scalar_prefetch = 0 : i64, scratch_operands = 0 : i64, tpu.core_type = #tpu.core_type<tc>, window_params = [{transform_indices = @transform_0, window_bounds = array<i64: 128, 64>}, {pipeline_mode = #tpu.pipeline_mode<synchronous>, transform_indices = @transform_1, window_bounds = array<i64: 256, 64>}, {pipeline_mode = #tpu.pipeline_mode<synchronous>, transform_indices = @transform_2, window_bounds = array<i64: 256, 1>}, {pipeline_mode = #tpu.pipeline_mode<synchronous>, transform_indices = @transform_3, window_bounds = array<i64: 128, 256>}, {pipeline_mode = #tpu.pipeline_mode<synchronous>, transform_indices = @transform_4, window_bounds = array<i64: 128, 1>}, {pipeline_mode = #tpu.pipeline_mode<synchronous>, transform_indices = @transform_5, window_bounds = array<i64: 64, 128>}, {pipeline_mode = #tpu.pipeline_mode<synchronous>, transform_indices = @transform_6, window_bounds = array<i64: 64, 1>}, {pipeline_mode = #tpu.pipeline_mode<synchronous>, transform_indices = @transform_7, window_bounds = array<i64: 32, 64>}, {pipeline_mode = #tpu.pipeline_mode<synchronous>, transform_indices = @transform_8, window_bounds = array<i64: 32, 1>}, {pipeline_mode = #tpu.pipeline_mode<synchronous>, transform_indices = @transform_9, window_bounds = array<i64: 32, 1>}, {pipeline_mode = #tpu.pipeline_mode<synchronous>, transform_indices = @transform_10, window_bounds = array<i64: 1, 1>}, {transform_indices = @transform_11, window_bounds = array<i64: 1, 128>}]} {
    %c0 = arith.constant 0 : index
    %c0_0 = arith.constant 0 : index
    %0 = vector.load %arg1[%c0, %c0_0] : memref<128x64xf32, #tpu.memory_space<vmem>>, vector<128x64xf32>
    %1 = arith.truncf %0 : vector<128x64xf32> to vector<128x64xbf16>
    %c0_1 = arith.constant 0 : index
    %c0_2 = arith.constant 0 : index
    %2 = vector.load %arg2[%c0_1, %c0_2] : memref<256x64xbf16, #tpu.memory_space<vmem>>, vector<256x64xbf16>
    %cst = arith.constant dense<0.000000e+00> : vector<256x128xf32>
    %3 = tpu.matmul %2, %1, %cst {dimension_numbers = #tpu.dot_dimension_numbers<[1], [1], [0], [0], [0, 0, 1, 0], [], []>} : vector<256x64xbf16>, vector<128x64xbf16>, vector<256x128xf32> -> vector<256x128xf32>
    %c0_3 = arith.constant 0 : index
    %c0_4 = arith.constant 0 : index
    %4 = vector.load %arg3[%c0_3, %c0_4] : memref<256x1xf32, #tpu.memory_space<vmem>>, vector<256x1xf32>
    %5 = vector.broadcast %4 : vector<256x1xf32> to vector<256x128xf32>
    %6 = arith.addf %3, %5 : vector<256x128xf32>
    %cst_5 = arith.constant 0.000000e+00 : f32
    %7 = vector.broadcast %cst_5 : f32 to vector<256x128xf32>
    %8 = arith.maximumf %6, %7 : vector<256x128xf32>
    %c0_6 = arith.constant 0 : index
    %c0_7 = arith.constant 0 : index
    %9 = vector.load %arg4[%c0_6, %c0_7] : memref<128x256xbf16, #tpu.memory_space<vmem>>, vector<128x256xbf16>
    %10 = arith.truncf %8 : vector<256x128xf32> to vector<256x128xbf16>
    %cst_8 = arith.constant dense<0.000000e+00> : vector<128x128xf32>
    %11 = tpu.matmul %9, %10, %cst_8 {dimension_numbers = #tpu.dot_dimension_numbers<[1], [0], [0], [1], [0, 0, 1, 1], [], []>} : vector<128x256xbf16>, vector<256x128xbf16>, vector<128x128xf32> -> vector<128x128xf32>
    %c0_9 = arith.constant 0 : index
    %c0_10 = arith.constant 0 : index
    %12 = vector.load %arg5[%c0_9, %c0_10] : memref<128x1xf32, #tpu.memory_space<vmem>>, vector<128x1xf32>
    %13 = vector.broadcast %12 : vector<128x1xf32> to vector<128x128xf32>
    %14 = arith.addf %11, %13 : vector<128x128xf32>
    %cst_11 = arith.constant 0.000000e+00 : f32
    %15 = vector.broadcast %cst_11 : f32 to vector<128x128xf32>
    %16 = arith.maximumf %14, %15 : vector<128x128xf32>
    %c0_12 = arith.constant 0 : index
    %c0_13 = arith.constant 0 : index
    %17 = vector.load %arg6[%c0_12, %c0_13] : memref<64x128xbf16, #tpu.memory_space<vmem>>, vector<64x128xbf16>
    %18 = arith.truncf %16 : vector<128x128xf32> to vector<128x128xbf16>
    %cst_14 = arith.constant dense<0.000000e+00> : vector<64x128xf32>
    %19 = tpu.matmul %17, %18, %cst_14 {dimension_numbers = #tpu.dot_dimension_numbers<[1], [0], [0], [1], [0, 0, 1, 1], [], []>} : vector<64x128xbf16>, vector<128x128xbf16>, vector<64x128xf32> -> vector<64x128xf32>
    %c0_15 = arith.constant 0 : index
    %c0_16 = arith.constant 0 : index
    %20 = vector.load %arg7[%c0_15, %c0_16] : memref<64x1xf32, #tpu.memory_space<vmem>>, vector<64x1xf32>
    %21 = vector.broadcast %20 : vector<64x1xf32> to vector<64x128xf32>
    %22 = arith.addf %19, %21 : vector<64x128xf32>
    %cst_17 = arith.constant 0.000000e+00 : f32
    %23 = vector.broadcast %cst_17 : f32 to vector<64x128xf32>
    %24 = arith.maximumf %22, %23 : vector<64x128xf32>
    %c0_18 = arith.constant 0 : index
    %c0_19 = arith.constant 0 : index
    %25 = vector.load %arg8[%c0_18, %c0_19] : memref<32x64xbf16, #tpu.memory_space<vmem>>, vector<32x64xbf16>
    %26 = arith.truncf %24 : vector<64x128xf32> to vector<64x128xbf16>
    %cst_20 = arith.constant dense<0.000000e+00> : vector<32x128xf32>
    %27 = tpu.matmul %25, %26, %cst_20 {dimension_numbers = #tpu.dot_dimension_numbers<[1], [0], [0], [1], [0, 0, 1, 1], [], []>} : vector<32x64xbf16>, vector<64x128xbf16>, vector<32x128xf32> -> vector<32x128xf32>
    %c0_21 = arith.constant 0 : index
    %c0_22 = arith.constant 0 : index
    %28 = vector.load %arg9[%c0_21, %c0_22] : memref<32x1xf32, #tpu.memory_space<vmem>>, vector<32x1xf32>
    %29 = vector.broadcast %28 : vector<32x1xf32> to vector<32x128xf32>
    %30 = arith.addf %27, %29 : vector<32x128xf32>
    %cst_23 = arith.constant 0.000000e+00 : f32
    %31 = vector.broadcast %cst_23 : f32 to vector<32x128xf32>
    %32 = arith.maximumf %30, %31 : vector<32x128xf32>
    %c0_24 = arith.constant 0 : index
    %c0_25 = arith.constant 0 : index
    %33 = vector.load %arg10[%c0_24, %c0_25] : memref<32x1xf32, #tpu.memory_space<vmem>>, vector<32x1xf32>
    %34 = vector.broadcast %33 : vector<32x1xf32> to vector<32x128xf32>
    %35 = arith.mulf %32, %34 : vector<32x128xf32>
    %cst_26 = arith.constant dense<0.000000e+00> : vector<128xf32>
    %36 = vector.multi_reduction <add>, %35, %cst_26 [0] : vector<32x128xf32> to vector<128xf32>
    %37 = vector.shape_cast %36 : vector<128xf32> to vector<1x128xf32>
    %c0_27 = arith.constant 0 : index
    %c0_28 = arith.constant 0 : index
    %38 = vector.load %arg11[%c0_27, %c0_28] : memref<1x1xf32, #tpu.memory_space<vmem>>, vector<1x1xf32>
    %39 = vector.broadcast %38 : vector<1x1xf32> to vector<1x128xf32>
    %40 = arith.addf %37, %39 : vector<1x128xf32>
    %c0_29 = arith.constant 0 : index
    %c0_30 = arith.constant 0 : index
    %41 = vector.load %arg12[%c0_29, %c0_30] : memref<1x128xf32, #tpu.memory_space<vmem>>, vector<1x128xf32>
    tpu.vector_store %arg12[%c0_29, %c0_30], %40 {strides = array<i32>} : memref<1x128xf32, #tpu.memory_space<vmem>>, vector<1x128xf32>,
    return
  }
  func.func @transform_0(%arg0: i32) -> (i32, i32) {
    %c0_i32 = arith.constant 0 : i32
    %c0_i32_0 = arith.constant 0 : i32
    return %arg0, %c0_i32 : i32, i32
  }
  func.func @transform_1(%arg0: i32) -> (i32, i32) {
    %c0_i32 = arith.constant 0 : i32
    %c0_i32_0 = arith.constant 0 : i32
    %c0_i32_1 = arith.constant 0 : i32
    return %c0_i32, %c0_i32_0 : i32, i32
  }
  func.func @transform_2(%arg0: i32) -> (i32, i32) {
    %c0_i32 = arith.constant 0 : i32
    %c0_i32_0 = arith.constant 0 : i32
    %c0_i32_1 = arith.constant 0 : i32
    return %c0_i32, %c0_i32_0 : i32, i32
  }
  func.func @transform_3(%arg0: i32) -> (i32, i32) {
    %c0_i32 = arith.constant 0 : i32
    %c0_i32_0 = arith.constant 0 : i32
    %c0_i32_1 = arith.constant 0 : i32
    return %c0_i32, %c0_i32_0 : i32, i32
  }
  func.func @transform_4(%arg0: i32) -> (i32, i32) {
    %c0_i32 = arith.constant 0 : i32
    %c0_i32_0 = arith.constant 0 : i32
    %c0_i32_1 = arith.constant 0 : i32
    return %c0_i32, %c0_i32_0 : i32, i32
  }
  func.func @transform_5(%arg0: i32) -> (i32, i32) {
    %c0_i32 = arith.constant 0 : i32
    %c0_i32_0 = arith.constant 0 : i32
    %c0_i32_1 = arith.constant 0 : i32
    return %c0_i32, %c0_i32_0 : i32, i32
  }
  func.func @transform_6(%arg0: i32) -> (i32, i32) {
    %c0_i32 = arith.constant 0 : i32
    %c0_i32_0 = arith.constant 0 : i32
    %c0_i32_1 = arith.constant 0 : i32
    return %c0_i32, %c0_i32_0 : i32, i32
  }
  func.func @transform_7(%arg0: i32) -> (i32, i32) {
    %c0_i32 = arith.constant 0 : i32
    %c0_i32_0 = arith.constant 0 : i32
    %c0_i32_1 = arith.constant 0 : i32
    return %c0_i32, %c0_i32_0 : i32, i32
  }
  func.func @transform_8(%arg0: i32) -> (i32, i32) {
    %c0_i32 = arith.constant 0 : i32
    %c0_i32_0 = arith.constant 0 : i32
    %c0_i32_1 = arith.constant 0 : i32
    return %c0_i32, %c0_i32_0 : i32, i32
  }
  func.func @transform_9(%arg0: i32) -> (i32, i32) {
    %c0_i32 = arith.constant 0 : i32
    %c0_i32_0 = arith.constant 0 : i32
    %c0_i32_1 = arith.constant 0 : i32
    return %c0_i32, %c0_i32_0 : i32, i32
  }
  func.func @transform_10(%arg0: i32) -> (i32, i32) {
    %c0_i32 = arith.constant 0 : i32
    %c0_i32_0 = arith.constant 0 : i32
    %c0_i32_1 = arith.constant 0 : i32
    return %c0_i32, %c0_i32_0 : i32, i32
  }
  func.func @transform_11(%arg0: i32) -> (i32, i32) {
    %c0_i32 = arith.constant 0 : i32
    %c0_i32_0 = arith.constant 0 : i32
    return %c0_i32, %arg0 : i32, i32
  }
}

</mosaic_0001>

<bundles_post_ra>
// kernel: tpu_custom_call.1
= control target key start
LH: loop header
LB: loop body
LE: loop exit
PB: predicated region body
PF: predicated region fallthrough
CT: control target
= control target key end

     0   :  { %s2745_s0 = inlined_call_operand.vmem [shape: f32[256,64], index: 0, kind: input, shape index: {}]   ;;  %s2746_s1 = inlined_call_operand.vmem [shape: bf16[256,64], index: 1, kind: input, shape index: {}]   ;;  %s2747_s2 = inlined_call_operand.vmem [shape: f32[256,1], index: 2, kind: input, shape index: {}]   ;;  %s2748_s3 = inlined_call_operand.vmem [shape: bf16[128,256], index: 3, kind: input, shape index: {}]   ;;  %s2749_s4 = inlined_call_operand.vmem [shape: f32[128,1], index: 4, kind: input, shape index: {}]   ;;  %s2750_s5 = inlined_call_operand.vmem [shape: bf16[64,128], index: 5, kind: input, shape index: {}]   ;;  %s2751_s6 = inlined_call_operand.vmem [shape: f32[64,1], index: 6, kind: input, shape index: {}]   ;;  %s2752_s7 = inlined_call_operand.vmem [shape: bf16[32,64], index: 7, kind: input, shape index: {}]   ;;  %s2753_s8 = inlined_call_operand.vmem [shape: f32[32,1], index: 8, kind: input, shape index: {}]   ;;  %s2754_s9 = inlined_call_operand.vmem [shape: f32[32,1], index: 9, kind: input, shape index: {}]   ;;  %s2755_s10 = inlined_call_operand.<no memory space> [shape: f32[1,1], index: 10, kind: input, shape index: {}]   ;;  %s2756_s11 = inlined_call_operand.hbm [shape: f32[1,256], index: 11, kind: output, shape index: {}]  }
   0x1   :  { %2757 = sst [smem:[#allocation6_spill]] %s2745_s0  ;;  %v16_v0 = vstv %s2755_s10 }
   0x2   :  { %17 = vst [vmem:[#allocation2] sm:$0x1] %v16_v0 }
   0x3   :  { %18 = vsyncpa [#allocation4], 0 }
   0x4   :  { %20 = vsyncpa [#allocation4 + $0x1], 0  ;;  %s2161_s19 = smov 0   ;;  %s2163_s20 = smov 0  }
   0x5   :  { %s2165_s21 = smov 0   ;;  %s2167_s22 = smov 0  }
   0x6 LB: > { %s1682_s10 = sadd.s32 4294967295, %s2094_s22   ;;  %s1683_s23 = sadd.s32 4294967294, %s2094_s22   ;;  %s2094_s22 = sphi %s2167_s22, %s2764_s22   ;;  %s2090_s21 = sphi %s2165_s21, %s2763_s21   ;;  %s2086_s20 = sphi %s2163_s20, %s2762_s20   ;;  %s2082_s19 = sphi %s2161_s19, %s2761_s19  }
   0x7   : > { %s2184_s24 = sadd.s32 1, %s2094_s22   ;;  %s269_s25 = sadd.s32 1, %s2090_s21 }
   0x8   : > { %s266_s26 = ssub.s32 %s2094_s22, %s2184_s24  ;;  %p279_p0 = scmp.ne.s32.totalorder %s2090_s21, %s2086_s20 }
   0x9   : > { %p267_p1 = scmp.eq.s32.totalorder %s266_s26, 0  ;;  %p280_p2 = scmp.eq.s32.totalorder %s1682_s10, 1 }
   0xa   : > { %p285_p3 = scmp.ne.s32.totalorder %s2086_s20, %s2082_s19  ;;  %p286_p4 = scmp.eq.s32.totalorder %s1683_s23, 1 }
   0xb   : > { %s2194_s27 = scalar_select %p267_p1, %s2090_s21, %s269_s25  }
   0xc   : > { %p2196_p5 = por %p280_p2, %p279_p0  ;;  %p2200_p6 = por %p286_p4, %p285_p3 }
   0xd   : > { %p1686_p7 = scmp.ge.s32.totalorder %s2094_s22, 1  ;;  %p343_p8 = scmp.lt.s32.totalorder %s2094_s22, 3 }
   0xf   : > { %p344_p9 = pnand %p1686_p7, %p343_p8 }
  0x10   : > { %s2206_s30 = sshll.u32 (!%p344_p9), %s1682_s10, 4  ;;  %s2760_s0 = sld [smem:[#allocation6_spill]] (!%p344_p9) }
  0x11   : > { %347 = sbr.rel (%p344_p9) target bundleno = 1144 (0x478), region = 64  ;;  %p383_p10 = scmp.lt.s32.totalorder (!%p344_p9), %s2206_s30, 31 }
  0x12   : > { %s380_s18 = sand.u32 (!%p344_p9), 1, %s2086_s20   ;;  %s2097_s13 = smov (!%p344_p9), [#allocation3]  }
  0x13   : > { %s1616_s26 = scalar_lea.sflag (!%p344_p9), [#allocation4], %s380_s18  ;;  %s2038_s14 = sshll.u32 (!%p344_p9), %s2097_s13, 4  ;;  %s2039_s14 = int_to_ptr.vmem [resolvable:$false] %s2038_s14 }
  0x14   : > { %s2040_s17 = scalar_lea.vmem (!%p344_p9), %s2039_s14, 32 }
  0x16   : > { %v475_v1 = vld [vmem:[%s2747_s2 + $0xf0] sm:$0xff]  ;;  %v2096_v3 = vmov 0   ;;  %s384_s16 = scalar_select %p383_p10, %s2206_s30, 31  ;;  %v476_v4 = vld [vmem:[%s2747_s2 + $0xf8] sm:$0xff]  ;;  %v1988_v6 = vld [vmem:[%s2746_s1] sm:$0xff]   ;;  %vm717_vm0 = vcmask 523264  }
  0x17   : > { %v459_v2 = vld [vmem:[%s2747_s2 + $0x70] sm:$0xff]  ;;  %1986 = vset.pattern.permute.xlu0 %v2096_v3  ;;  %1987 = vset.pattern.permute.xlu1 %v2096_v3  ;;  %v460_v5 = vld [vmem:[%s2747_s2 + $0x78] sm:$0xff]  ;;  %v473_v7 = vld [vmem:[%s2747_s2 + $0xe0] sm:$0xff] }
  0x18   : > { %629 = vperm.xlu0 %1986, %v475_v1   ;;  %549 = vperm.xlu1 %1987, %v459_v2   ;;  %s1688_s25 = sshll.u32 %s384_s16, 3  ;;  %v474_v13 = vld [vmem:[%s2747_s2 + $0xe8] sm:$0xff]  ;;  %v457_v16 = vld [vmem:[%s2747_s2 + $0x60] sm:$0xff]  ;;  %v471_v20 = vld [vmem:[%s2747_s2 + $0xd0] sm:$0xff]  ;;  %s381_s16 = scalar_lea.vmem [#allocation3], %s380_s18 }
  0x19   : > { %s2228_s15 = scalar_lea.vmem %s2760_s0, %s1688_s25  ;;  %1870 = vmatprep.mubr.msk.bf16.mxu0 %vm717_vm0, %v1988_v6  ;;  %v458_v17 = vld [vmem:[%s2747_s2 + $0x68] sm:$0xff]  ;;  %v472_v23 = vld [vmem:[%s2747_s2 + $0xd8] sm:$0xff]  ;;  %v455_v24 = vld [vmem:[%s2747_s2 + $0x50] sm:$0xff]  ;;  %s1628_s10 = sshll.u32 %s381_s16, 4  ;;  %s1629_s10 = int_to_ptr.vmem [resolvable:$true] %s1628_s10 }
  0x1a   : > { %v403_v8 = vld [vmem:[%s2228_s15 + $0x70] sm:$0xff]  ;;  %v404_v9 = vld [vmem:[%s2228_s15 + $0x78] sm:$0xff]  ;;  %v401_v10 = vld [vmem:[%s2228_s15 + $0x60] sm:$0xff]  ;;  %s1626_s25 = scalar_lea.hbm %s2756_s11, %s2206_s30  ;;  %s2034_s12 = scalar_lea.vmem %s1629_s10, 16 }
  0x1b   : > { %v412_v11 = vpack.c.bf16 %v404_v9, %v403_v8  ;;  %v402_v12 = vld [vmem:[%s2228_s15 + $0x68] sm:$0xff]  ;;  %v399_v18 = vld [vmem:[%s2228_s15 + $0x50] sm:$0xff]  ;;  %v400_v19 = vld [vmem:[%s2228_s15 + $0x58] sm:$0xff]  ;;  %p2035_p11 = scmp.ne.s32.totalorder %s1629_s10, %s2034_s12  ;;  %p2041_p0 = scmp.lt.s32.totalorder %s1629_s10, %s2039_s14 }
  0x1c   : > { %634 = vperm.xlu0 %1986, %v476_v4   ;;  %554 = vperm.xlu1 %1987, %v460_v5   ;;  %v411_v14 = vpack.c.bf16 %v402_v12, %v401_v10  ;;  %v410_v22 = vpack.c.bf16 %v400_v19, %v399_v18  ;;  %v456_v25 = vld [vmem:[%s2747_s2 + $0x58] sm:$0xff]  ;;  %v397_v26 = vld [vmem:[%s2228_s15 + $0x40] sm:$0xff]  ;;  %v398_v27 = vld [vmem:[%s2228_s15 + $0x48] sm:$0xff]  ;;  %p2042_p1 = scmp.lt.s32.totalorder %s2040_s17, %s2034_s12 }
  0x1d   : > { %1938 = vmatprep.subr.msk.bf16.mxu0 %vm717_vm0, %v412_v11  ;;  %v788_v15 = vsel %vm717_vm0, %v412_v11, 0  ;;  %v469_v28 = vld [vmem:[%s2747_s2 + $0xc0] sm:$0xff]  ;;  %v409_v30 = vpack.c.bf16 %v398_v27, %v397_v26  ;;  %v470_v31 = vld [vmem:[%s2747_s2 + $0xc8] sm:$0xff]  ;;  %v395_v34 = vld [vmem:[%s2228_s15 + $0x30] sm:$0xff]  ;;  %p2036_p12 = pnand %p2035_p11, %p2196_p5 }
  0x1e   : > { %1855 = vmatpush3.bf16.xpose.msra.mxu0 %v788_v15  ;;  %v785_v21 = vsel %vm717_vm0, %v411_v14, 0  ;;  %v782_v29 = vsel %vm717_vm0, %v410_v22, 0  ;;  %v453_v32 = vld [vmem:[%s2747_s2 + $0x40] sm:$0xff]  ;;  %v454_v33 = vld [vmem:[%s2747_s2 + $0x48] sm:$0xff]  ;;  %v396_v35 = vld [vmem:[%s2228_s15 + $0x38] sm:$0xff]  ;;  %p2043_p2 = por %p2042_p1, %p2041_p0 }
  0x1f   : > { %1939 = vmatprep.subr.msk.bf16.mxu0 %vm717_vm0, %v411_v14  ;;  %v467_v36 = vld [vmem:[%s2747_s2 + $0xb0] sm:$0xff]  ;;  %v779_v37 = vsel %vm717_vm0, %v409_v30, 0  ;;  %v408_v38 = vpack.c.bf16 %v396_v35, %v395_v34  ;;  %v468_v39 = vld [vmem:[%s2747_s2 + $0xb8] sm:$0xff]  ;;  %v393_v42 = vld [vmem:[%s2228_s15 + $0x20] sm:$0xff]  ;;  %p2037_p13 = pneg %p2036_p12 }
  0x20   : > { %619 = vperm.xlu0 %1986, %v473_v7   ;;  %624 = vperm.xlu1 %1987, %v474_v13   ;;  %v451_v40 = vld [vmem:[%s2747_s2 + $0x30] sm:$0xff]  ;;  %v452_v41 = vld [vmem:[%s2747_s2 + $0x38] sm:$0xff]  ;;  %v394_v43 = vld [vmem:[%s2228_s15 + $0x28] sm:$0xff] }
  0x21   : > { %v465_v44 = vld [vmem:[%s2747_s2 + $0xa0] sm:$0xff]  ;;  %v776_v45 = vsel %vm717_vm0, %v408_v38, 0  ;;  %v407_v46 = vpack.c.bf16 %v394_v43, %v393_v42  ;;  %v466_v47 = vld [vmem:[%s2747_s2 + $0xa8] sm:$0xff]  ;;  %v391_v50 = vld [vmem:[%s2228_s15 + $0x10] sm:$0xff]  ;;  %p2044_p3 = pnand %p2043_p2, %p2037_p13 }
  0x22   : > { %v449_v48 = vld [vmem:[%s2747_s2 + $0x20] sm:$0xff]  ;;  %v450_v49 = vld [vmem:[%s2747_s2 + $0x28] sm:$0xff]  ;;  %v392_v51 = vld [vmem:[%s2228_s15 + $0x18] sm:$0xff] }
  0x23   : > { %v463_v52 = vld [vmem:[%s2747_s2 + $0x90] sm:$0xff]  ;;  %v464_v53 = vld [vmem:[%s2747_s2 + $0x98] sm:$0xff]  ;;  %v773_v54 = vsel %vm717_vm0, %v407_v46, 0  ;;  %v406_v55 = vpack.c.bf16 %v392_v51, %v391_v50  ;;  %v389_v58 = vld [vmem:[%s2228_s15] sm:$0xff] }
  0x24   : > { %539 = vperm.xlu0 %1986, %v457_v16   ;;  %544 = vperm.xlu1 %1987, %v458_v17   ;;  %v447_v56 = vld [vmem:[%s2747_s2 + $0x10] sm:$0xff]  ;;  %v448_v57 = vld [vmem:[%s2747_s2 + $0x18] sm:$0xff]  ;;  %v390_v59 = vld [vmem:[%s2228_s15 + $0x8] sm:$0xff] }
  0x25   : > { %v461_v60 = vld [vmem:[%s2747_s2 + $0x80] sm:$0xff]  ;;  %v770_v61 = vsel %vm717_vm0, %v406_v55, 0  ;;  %v405_v62 = vpack.c.bf16 %v390_v59, %v389_v58  ;;  %v462_v63 = vld [vmem:[%s2747_s2 + $0x88] sm:$0xff]  ;;  %v1029_v2 = vld [vmem:[%s2749_s4 + $0x70] sm:$0xff] }
  0x26   : > { %1857 = vmatpush3.bf16.xpose.msra.mxu0 %v785_v21  ;;  %v445_v0 = vld [vmem:[%s2747_s2] sm:$0xff]  ;;  %v446_v1 = vld [vmem:[%s2747_s2 + $0x8] sm:$0xff]  ;;  %v1030_v4 = vld [vmem:[%s2749_s4 + $0x78] sm:$0xff] }
  0x27   : > { %1940 = vmatprep.subr.msk.bf16.mxu0 %vm717_vm0, %v410_v22  ;;  %v767_v3 = vsel %vm717_vm0, %v405_v62, 0  ;;  %v1027_v5 = vld [vmem:[%s2749_s4 + $0x60] sm:$0xff]  ;;  %v1028_v6 = vld [vmem:[%s2749_s4 + $0x68] sm:$0xff]  ;;  %v1990_v8 = vld [vmem:[%s2746_s1 + $0x10] sm:$0xff]  }
  0x28   : > { %609 = vperm.xlu0 %1986, %v471_v20   ;;  %614 = vperm.xlu1 %1987, %v472_v23   ;;  %v1989_v7 = vld [vmem:[%s2746_s1 + $0x8] sm:$0xff]   ;;  %v1025_v9 = vld [vmem:[%s2749_s4 + $0x50] sm:$0xff]  ;;  %v1026_v10 = vld [vmem:[%s2749_s4 + $0x58] sm:$0xff] }
  0x29   : > { %v1023_v11 = vld [vmem:[%s2749_s4 + $0x40] sm:$0xff]  ;;  %v1024_v12 = vld [vmem:[%s2749_s4 + $0x48] sm:$0xff]  ;;  %v1991_v13 = vld [vmem:[%s2746_s1 + $0x18] sm:$0xff]  }
  0x2a   : > { %v1992_v14 = vld [vmem:[%s2746_s1 + $0x20] sm:$0xff]   ;;  %v1021_v15 = vld [vmem:[%s2749_s4 + $0x30] sm:$0xff]  ;;  %v1022_v16 = vld [vmem:[%s2749_s4 + $0x38] sm:$0xff] }
  0x2b   : > { %v1019_v17 = vld [vmem:[%s2749_s4 + $0x20] sm:$0xff]  ;;  %v1020_v18 = vld [vmem:[%s2749_s4 + $0x28] sm:$0xff]  ;;  %v1994_v20 = vld [vmem:[%s2746_s1 + $0x30] sm:$0xff]  }
  0x2c   : > { %529 = vperm.xlu0 %1986, %v455_v24   ;;  %534 = vperm.xlu1 %1987, %v456_v25   ;;  %v1993_v19 = vld [vmem:[%s2746_s1 + $0x28] sm:$0xff]   ;;  %v1017_v21 = vld [vmem:[%s2749_s4 + $0x10] sm:$0xff]  ;;  %v1018_v22 = vld [vmem:[%s2749_s4 + $0x18] sm:$0xff] }
  0x2d   : > { %v1015_v23 = vld [vmem:[%s2749_s4] sm:$0xff]  ;;  %v1016_v24 = vld [vmem:[%s2749_s4 + $0x8] sm:$0xff]  ;;  %v1995_v25 = vld [vmem:[%s2746_s1 + $0x38] sm:$0xff]  }
  0x2e   : > { %1859 = vmatpush3.bf16.xpose.msra.mxu0 %v782_v29  ;;  %v1996_v26 = vld [vmem:[%s2746_s1 + $0x40] sm:$0xff]   ;;  %v1326_v27 = vld [vmem:[%s2751_s6 + $0x30] sm:$0xff]  ;;  %v1323_v34 = vld [vmem:[%s2751_s6 + $0x18] sm:$0xff] }
  0x2f   : > { %1941 = vmatprep.subr.msk.bf16.mxu0 %vm717_vm0, %v409_v30  ;;  %v1324_v29 = vld [vmem:[%s2751_s6 + $0x20] sm:$0xff]  ;;  %v1325_v30 = vld [vmem:[%s2751_s6 + $0x28] sm:$0xff]  ;;  %v1476_v42 = vld [vmem:[%s2753_s8 + $0x18] sm:$0xff] }
  0x30   : > { %599 = vperm.xlu0 %1986, %v469_v28   ;;  %604 = vperm.xlu1 %1987, %v470_v31   ;;  %v1327_v28 = vld [vmem:[%s2751_s6 + $0x38] sm:$0xff]  ;;  %v1997_v31 = vld [vmem:[%s2746_s1 + $0x48] sm:$0xff]   ;;  %v1320_v35 = vld [vmem:[%s2751_s6] sm:$0xff] }
  0x31   : > { %v2001_v43 = vld [vmem:[%s2746_s1 + $0x68] sm:$0xff]   ;;  %v1603_v50 = vld [vmem:[#allocation2] sm:$0x1] }
  0x34   : > { %519 = vperm.xlu0 %1986, %v453_v32   ;;  %524 = vperm.xlu1 %1987, %v454_v33   ;;  %v1998_v32 = vld [vmem:[%s2746_s1 + $0x50] sm:$0xff]  }
  0x35   : > { %v1322_v33 = vld [vmem:[%s2751_s6 + $0x10] sm:$0xff] }
  0x36   : > { %1861 = vmatpush3.bf16.xpose.msra.mxu0 %v779_v37  ;;  %v1999_v37 = vld [vmem:[%s2746_s1 + $0x58] sm:$0xff]  }
  0x37   : > { %1942 = vmatprep.subr.msk.bf16.mxu0 %vm717_vm0, %v408_v38  ;;  %v2000_v38 = vld [vmem:[%s2746_s1 + $0x60] sm:$0xff]  }
  0x38   : > { %589 = vperm.xlu0 %1986, %v467_v36   ;;  %594 = vperm.xlu1 %1987, %v468_v39   ;;  %v1321_v36 = vld [vmem:[%s2751_s6 + $0x8] sm:$0xff]  ;;  %v1473_v39 = vld [vmem:[%s2753_s8] sm:$0xff] }
  0x3c   : > { %509 = vperm.xlu0 %1986, %v451_v40   ;;  %514 = vperm.xlu1 %1987, %v452_v41   ;;  %v1474_v40 = vld [vmem:[%s2753_s8 + $0x8] sm:$0xff]  ;;  %v1475_v41 = vld [vmem:[%s2753_s8 + $0x10] sm:$0xff] }
  0x3e   : > { %1863 = vmatpush3.bf16.xpose.msra.mxu0 %v776_v45  ;;  %v1566_v45 = vld [vmem:[%s2754_s9] sm:$0xff] }
  0x3f   : > { %1943 = vmatprep.subr.msk.bf16.mxu0 %vm717_vm0, %v407_v46  ;;  %v1567_v46 = vld [vmem:[%s2754_s9 + $0x8] sm:$0xff] }
  0x40   : > { %579 = vperm.xlu0 %1986, %v465_v44   ;;  %584 = vperm.xlu1 %1987, %v466_v47   ;;  %v2002_v44 = vld [vmem:[%s2746_s1 + $0x70] sm:$0xff]  }
  0x41   : > { %v1568_v47 = vld [vmem:[%s2754_s9 + $0x10] sm:$0xff] }
  0x44   : > { %499 = vperm.xlu0 %1986, %v449_v48   ;;  %504 = vperm.xlu1 %1987, %v450_v49   ;;  %v1569_v48 = vld [vmem:[%s2754_s9 + $0x18] sm:$0xff] }
  0x45   : > { %v2003_v49 = vld [vmem:[%s2746_s1 + $0x78] sm:$0xff]  }
  0x46   : > { %1865 = vmatpush3.bf16.xpose.msra.mxu0 %v773_v54 }
  0x47   : > { %1944 = vmatprep.subr.msk.bf16.mxu0 %vm717_vm0, %v406_v55 }
  0x48   : > { %569 = vperm.xlu0 %1986, %v463_v52   ;;  %574 = vperm.xlu1 %1987, %v464_v53  }
  0x4c   : > { %489 = vperm.xlu0 %1986, %v447_v56   ;;  %494 = vperm.xlu1 %1987, %v448_v57  }
  0x4e   : > { %1867 = vmatpush3.bf16.xpose.msra.mxu0 %v770_v61 }
  0x4f   : > { %1945 = vmatprep.subr.msk.bf16.mxu0 %vm717_vm0, %v405_v62 }
  0x50   : > { %559 = vperm.xlu0 %1986, %v461_v60   ;;  %564 = vperm.xlu1 %1987, %v462_v63  }
  0x54   : > { %479 = vperm.xlu0 %1986, %v445_v0   ;;  %484 = vperm.xlu1 %1987, %v446_v1  }
  0x56   : > { %1869 = vmatpush3.bf16.xpose.msra.mxu0 %v767_v3 }
  0x58   : > { %1103 = vperm.xlu0 %1986, %v1029_v2   ;;  %1108 = vperm.xlu1 %1987, %v1030_v4  }
  0x5c   : > { %1093 = vperm.xlu0 %1986, %v1027_v5   ;;  %1098 = vperm.xlu1 %1987, %v1028_v6   ;;  %v2006_v6 = vld [vmem:[%s2748_s3 + $0x4] ss:$8 sps:$4 sm:$0xff]  }
  0x5d   : > { %1871 = vmatmul.mubr.msk.bf16.vlgmr.msra.gmra.mxu0 %vm717_vm0, %v1989_v7  ;;  %1223 = vmatprep.mubr.bf16.mxu1 %v2006_v6 }
  0x5e   : > { %1874 = vmatprep.mubr.msk.bf16.mxu0 %vm717_vm0, %v1990_v8 }
  0x60   : > { %1083 = vperm.xlu0 %1986, %v1025_v9   ;;  %1088 = vperm.xlu1 %1987, %v1026_v10  }
  0x64   : > { %1073 = vperm.xlu0 %1986, %v1023_v11   ;;  %1078 = vperm.xlu1 %1987, %v1024_v12  }
  0x65   : > { %1875 = vmatmul.mubr.msk.bf16.gmra.mxu0 %vm717_vm0, %v1991_v13 }
  0x66   : > { %1878 = vmatprep.mubr.msk.bf16.mxu0 %vm717_vm0, %v1992_v14 }
  0x68   : > { %1063 = vperm.xlu0 %1986, %v1021_v15   ;;  %1068 = vperm.xlu1 %1987, %v1022_v16  }
  0x6c   : > { %1053 = vperm.xlu0 %1986, %v1019_v17   ;;  %1058 = vperm.xlu1 %1987, %v1020_v18  }
  0x6d   : > { %1879 = vmatmul.mubr.msk.bf16.gmra.mxu0 %vm717_vm0, %v1993_v19 }
  0x6e   : > { %1882 = vmatprep.mubr.msk.bf16.mxu0 %vm717_vm0, %v1994_v20 }
  0x70   : > { %1043 = vperm.xlu0 %1986, %v1017_v21   ;;  %1048 = vperm.xlu1 %1987, %v1018_v22  }
  0x74   : > { %1033 = vperm.xlu0 %1986, %v1015_v23   ;;  %1038 = vperm.xlu1 %1987, %v1016_v24  }
  0x75   : > { %1883 = vmatmul.mubr.msk.bf16.gmra.mxu0 %vm717_vm0, %v1995_v25 }
  0x76   : > { %1886 = vmatprep.mubr.msk.bf16.mxu0 %vm717_vm0, %v1996_v26 }
  0x78   : > { %1360 = vperm.xlu0 %1986, %v1326_v27   ;;  %1365 = vperm.xlu1 %1987, %v1327_v28  }
  0x7c   : > { %1350 = vperm.xlu0 %1986, %v1324_v29   ;;  %1355 = vperm.xlu1 %1987, %v1325_v30  }
  0x7d   : > { %1887 = vmatmul.mubr.msk.bf16.gmra.mxu0 %vm717_vm0, %v1997_v31 }
  0x7e   : > { %1890 = vmatprep.mubr.msk.bf16.mxu0 %vm717_vm0, %v1998_v32 }
  0x80   : > { %1340 = vperm.xlu0 %1986, %v1322_v33   ;;  %1345 = vperm.xlu1 %1987, %v1323_v34  }
  0x84   : > { %1330 = vperm.xlu0 %1986, %v1320_v35   ;;  %1335 = vperm.xlu1 %1987, %v1321_v36  }
  0x85   : > { %1891 = vmatmul.mubr.msk.bf16.gmra.mxu0 %vm717_vm0, %v1999_v37 }
  0x86   : > { %1894 = vmatprep.mubr.msk.bf16.mxu0 %vm717_vm0, %v2000_v38 }
  0x88   : > { %1479 = vperm.xlu0 %1986, %v1473_v39   ;;  %1484 = vperm.xlu1 %1987, %v1474_v40  }
  0x8c   : > { %1489 = vperm.xlu0 %1986, %v1475_v41   ;;  %1494 = vperm.xlu1 %1987, %v1476_v42  }
  0x8d   : > { %1895 = vmatmul.mubr.msk.bf16.gmra.mxu0 %vm717_vm0, %v2001_v43 }
  0x8e   : > { %1898 = vmatprep.mubr.msk.bf16.mxu0 %vm717_vm0, %v2002_v44 }
  0x90   : > { %1572 = vperm.xlu0 %1986, %v1566_v45   ;;  %1577 = vperm.xlu1 %1987, %v1567_v46  }
  0x93   : > { %v2503_v51 = vpop.permute.xlu0 %629  ;;  %v2505_v52 = vpop.permute.xlu1 %549 }
  0x94   : > { %1582 = vperm.xlu0 %1986, %v1568_v47   ;;  %1587 = vperm.xlu1 %1987, %v1569_v48  }
  0x95   : > { %1899 = vmatmul.mubr.msk.bf16.gmra.mxu0 %vm717_vm0, %v2003_v49 }
  0x97   : > { %v2507_v53 = vpop.permute.xlu0 %634  ;;  %v2509_v54 = vpop.permute.xlu1 %554 }
  0x98   : > { %1606 = vperm.xlu0 %1986, %v1603_v50  }
  0x9b   : > { %v2511_v55 = vpop.permute.xlu0 %619  ;;  %v2513_v56 = vpop.permute.xlu1 %624 }
  0x9f   : > { %v2515_v57 = vpop.permute.xlu0 %539  ;;  %v2517_v58 = vpop.permute.xlu1 %544 }
  0xa3   : > { %v2519_v59 = vpop.permute.xlu0 %609  ;;  %v2521_v60 = vpop.permute.xlu1 %614 }
  0xa7   : > { %v2523_v61 = vpop.permute.xlu0 %529  ;;  %v2525_v62 = vpop.permute.xlu1 %534 }
  0xab   : > { %v2527_v63 = vpop.permute.xlu0 %599  ;;  %v2529_v0 = vpop.permute.xlu1 %604 }
  0xaf   : > { %v2531_v1 = vpop.permute.xlu0 %519  ;;  %v2533_v2 = vpop.permute.xlu1 %524 }
  0xb3   : > { %v2535_v3 = vpop.permute.xlu0 %589  ;;  %v2537_v4 = vpop.permute.xlu1 %594 }
  0xb7   : > { %v510_v5 = vpop.permute.xlu0 %509  ;;  %v515_v7 = vpop.permute.xlu1 %514 }
  0xbb   : > { %v2542_v8 = vpop.permute.xlu0 %579  ;;  %v2544_v9 = vpop.permute.xlu1 %584 }
  0xbf   : > { %v500_v10 = vpop.permute.xlu0 %499  ;;  %v505_v11 = vpop.permute.xlu1 %504 }
  0xc3   : > { %v2546_v12 = vpop.permute.xlu0 %569  ;;  %v2548_v13 = vpop.permute.xlu1 %574 }
  0xc7   : > { %v490_v14 = vpop.permute.xlu0 %489  ;;  %v495_v15 = vpop.permute.xlu1 %494 }
  0xcb   : > { %v2550_v16 = vpop.permute.xlu0 %559  ;;  %v2552_v17 = vpop.permute.xlu1 %564 }
  0xcf   : > { %v480_v21 = vpop.permute.xlu0 %479  ;;  %v485_v25 = vpop.permute.xlu1 %484 }
 0x11d   : > { %v1872_v18 = vpop.f32.mrf.mxu0 }
 0x11e   : > { %v833_v20 = vadd.f32 %v1872_v18, %v490_v14 }
 0x11f   : > { %v824_v19 = vpop.f32.mrf.mxu0 }
 0x120   : > { %v825_v23 = vadd.f32 %v824_v19, %v480_v21  ;;  %v953_v27 = vmax.f32 %v833_v20, 0.0 }
 0x121   : > { %v1873_v22 = vpop.f32.mrf.mxu0 }
 0x122   : > { %v836_v24 = vadd.f32 %v1873_v22, %v495_v15  ;;  %v951_v31 = vmax.f32 %v825_v23, 0.0 }
 0x123   : > { %v827_v26 = vpop.f32.mrf.mxu0 }
 0x124   : > { %v954_v28 = vmax.f32 %v836_v24, 0.0  ;;  %v828_v29 = vadd.f32 %v827_v26, %v485_v25 }
 0x125   : > { %v1876_v30 = vpop.f32.mrf.mxu0 }
 0x126   : > { %v2554_v32 = vpack.c.bf16 %v954_v28, %v953_v27  ;;  %v952_v33 = vmax.f32 %v828_v29, 0.0  ;;  %v849_v36 = vadd.f32 %v1876_v30, %v510_v5 }
 0x127   : > { %v840_v34 = vpop.f32.mrf.mxu0 }
 0x128   : > { %v2556_v35 = vpack.c.bf16 %v952_v33, %v951_v31  ;;  %v841_v38 = vadd.f32 %v840_v34, %v500_v10  ;;  %v957_v41 = vmax.f32 %v849_v36, 0.0 }
 0x129   : > { %v1877_v37 = vpop.f32.mrf.mxu0 }
 0x12a   : > { %v852_v39 = vadd.f32 %v1877_v37, %v515_v7  ;;  %v955_v45 = vmax.f32 %v841_v38, 0.0 }
 0x12b   : > { %v843_v40 = vpop.f32.mrf.mxu0 }
 0x12c   : > { %v958_v42 = vmax.f32 %v852_v39, 0.0  ;;  %v844_v43 = vadd.f32 %v843_v40, %v505_v11 }
 0x12d   : > { %v1880_v44 = vpop.f32.mrf.mxu0 }
 0x12e   : > { %v2558_v46 = vpack.c.bf16 %v958_v42, %v957_v41  ;;  %v956_v47 = vmax.f32 %v844_v43, 0.0 }
 0x12f   : > { %v856_v48 = vpop.f32.mrf.mxu0 }
 0x130   : > { %v2560_v49 = vpack.c.bf16 %v956_v47, %v955_v45 }
 0x131   : > { %v1881_v50 = vpop.f32.mrf.mxu0 }
 0x133   : > { %v859_v6 = vpop.f32.mrf.mxu0 }
 0x135   : > { %v1884_v14 = vpop.f32.mrf.mxu0 }
 0x136   : > { %v881_v33 = vadd.f32 %v1884_v14, %v2505_v52 }
 0x137   : > { %v872_v15 = vpop.f32.mrf.mxu0 }
 0x138   : > { %v965_v45 = vmax.f32 %v881_v33, 0.0 }
 0x139   : > { %v1885_v5 = vpop.f32.mrf.mxu0 }
 0x13a   : > { %v884_v29 = vadd.f32 %v1885_v5, %v2509_v54 }
 0x13b   : > { %v875_v18 = vpop.f32.mrf.mxu0 }
 0x13c   : > { %v966_v38 = vmax.f32 %v884_v29, 0.0  ;;  %v876_v39 = vadd.f32 %v875_v18, %v2517_v58 }
 0x13d   : > { %v2562_v10 = vpop.f32.mrf.mxu0 }
 0x13e   : > { %v964_v5 = vmax.f32 %v876_v39, 0.0  ;;  %v2019_v39 = vld [vmem:[%s2748_s3 + $0x54] ss:$8 sps:$4 sm:$0xff]  }
 0x13f   : > { %v2564_v7 = vpop.f32.mrf.mxu0 }
 0x141   : > { %v2566_v19 = vpop.f32.mrf.mxu0 }
 0x143   : > { %v2568_v11 = vpop.f32.mrf.mxu0 }
 0x145   : > { %v1892_v20 = vpop.f32.mrf.mxu0 }
 0x147   : > { %v904_v21 = vpop.f32.mrf.mxu0 }
 0x149   : > { %v1893_v22 = vpop.f32.mrf.mxu0 }
 0x14b   : > { %v907_v23 = vpop.f32.mrf.mxu0 }
 0x14d   : > { %v1896_v24 = vpop.f32.mrf.mxu0 }
 0x14e   : > { %v929_v52 = vadd.f32 %v1896_v24, %v2519_v59 }
 0x14f   : > { %v920_v25 = vpop.f32.mrf.mxu0 }
 0x150   : > { %v977_v29 = vmax.f32 %v929_v52, 0.0 }
 0x151   : > { %v1897_v26 = vpop.f32.mrf.mxu0 }
 0x152   : > { %v932_v41 = vadd.f32 %v1897_v26, %v2521_v60  ;;  %v865_v26 = vadd.f32 %v1880_v44, %v2523_v61  ;;  %v913_v61 = vadd.f32 %v1892_v20, %v2535_v3  ;;  %v897_v20 = vadd.f32 %v2562_v10, %v2546_v12  ;;  %v2015_v10 = vld [vmem:[%s2748_s3 + $0x30] ss:$8 sps:$4 sm:$0xff]  }
 0x153   : > { %v923_v27 = vpop.f32.mrf.mxu0 }
 0x154   : > { %v978_v58 = vmax.f32 %v932_v41, 0.0  ;;  %v924_v18 = vadd.f32 %v923_v27, %v2529_v0  ;;  %v857_v0 = vadd.f32 %v856_v48, %v2531_v1  ;;  %v900_v1 = vadd.f32 %v2566_v19, %v2548_v13  ;;  %v2022_v41 = vld [vmem:[%s2748_s3 + $0x64] ss:$8 sps:$4 sm:$0xff]  }
 0x155   : > { %v1900_v28 = vpop.f32.mrf.mxu0 }
 0x156   : > { %v945_v31 = vadd.f32 %v1900_v28, %v2503_v51  ;;  %v873_v51 = vadd.f32 %v872_v15, %v2515_v57  ;;  %v1006_v28 = vpack.c.bf16 %v966_v38, %v965_v45  ;;  %v921_v57 = vadd.f32 %v920_v25, %v2527_v63  ;;  %v2647_v45 = vpop.permute.xlu0 %1103 }
 0x157   : > { %v936_v30 = vpop.f32.mrf.mxu0  ;;  %v860_v15 = vadd.f32 %v859_v6, %v2533_v2  ;;  %v908_v25 = vadd.f32 %v907_v23, %v2544_v9  ;;  %v959_v2 = vmax.f32 %v857_v0, 0.0  ;;  %v973_v6 = vmax.f32 %v913_v61, 0.0 }
 0x158   : > { %v937_v36 = vadd.f32 %v936_v30, %v2511_v55  ;;  %v981_v42 = vmax.f32 %v945_v31, 0.0  ;;  %v976_v30 = vmax.f32 %v924_v18, 0.0  ;;  %v961_v31 = vmax.f32 %v865_v26, 0.0 }
 0x159   : > { %v1901_v34 = vpop.f32.mrf.mxu0  ;;  %v975_v44 = vmax.f32 %v921_v57, 0.0  ;;  %v960_v33 = vmax.f32 %v860_v15, 0.0  ;;  %v972_v3 = vmax.f32 %v908_v25, 0.0  ;;  %v970_v9 = vmax.f32 %v900_v1, 0.0 }
 0x15a   : > { %v948_v37 = vadd.f32 %v1901_v34, %v2507_v53  ;;  %v979_v47 = vmax.f32 %v937_v36, 0.0  ;;  %v868_v53 = vadd.f32 %v1881_v50, %v2525_v62  ;;  %v916_v62 = vadd.f32 %v1893_v22, %v2537_v4  ;;  %v2651_v52 = vpop.permute.xlu0 %1093 }
 0x15b   : > { %v939_v40 = vpop.f32.mrf.mxu0  ;;  %v1012_v50 = vpack.c.bf16 %v978_v58, %v977_v29  ;;  %v1011_v34 = vpack.c.bf16 %v976_v30, %v975_v44  ;;  %v905_v4 = vadd.f32 %v904_v21, %v2542_v8  ;;  %v1003_v22 = vpack.c.bf16 %v960_v33, %v959_v2 }
 0x15c   : > { %v982_v43 = vmax.f32 %v948_v37, 0.0  ;;  %v940_v54 = vadd.f32 %v939_v40, %v2513_v56  ;;  %v963_v56 = vmax.f32 %v873_v51, 0.0  ;;  %v962_v59 = vmax.f32 %v868_v53, 0.0  ;;  %v2021_v40 = vld [vmem:[%s2748_s3 + $0x50] ss:$8 sps:$4 sm:$0xff]   ;;  %v2649_v51 = vpop.permute.xlu1 %1108 }
 0x15d   : > { %v974_v63 = vmax.f32 %v916_v62, 0.0  ;;  %v971_v36 = vmax.f32 %v905_v4, 0.0  ;;  %v892_v23 = vadd.f32 %v2568_v11, %v2552_v17  ;;  %v969_v8 = vmax.f32 %v897_v20, 0.0  ;;  %v2004_v17 = vld [vmem:[%s2748_s3] ss:$8 sps:$4 sm:$0xff]  }
 0x15e   : > { %v980_v14 = vmax.f32 %v940_v54, 0.0  ;;  %v1014_v55 = vpack.c.bf16 %v982_v43, %v981_v42  ;;  %v1005_v24 = vpack.c.bf16 %v964_v5, %v963_v56  ;;  %v1004_v27 = vpack.c.bf16 %v962_v59, %v961_v31  ;;  %v2018_v11 = vld [vmem:[%s2748_s3 + $0x40] ss:$8 sps:$4 sm:$0xff]   ;;  %v2025_v43 = vld [vmem:[%s2748_s3 + $0x74] ss:$8 sps:$4 sm:$0xff]  }
 0x15f   : > { %v1010_v48 = vpack.c.bf16 %v974_v63, %v973_v6  ;;  %v1009_v37 = vpack.c.bf16 %v972_v3, %v971_v36  ;;  %v889_v21 = vadd.f32 %v2564_v7, %v2550_v16  ;;  %v1008_v13 = vpack.c.bf16 %v970_v9, %v969_v8  ;;  %v2007_v16 = vld [vmem:[%s2748_s3 + $0x14] ss:$8 sps:$4 sm:$0xff]   ;;  %v2016_v7 = vld [vmem:[%s2748_s3 + $0x44] ss:$8 sps:$4 sm:$0xff]   ;;  %v2024_v42 = vld [vmem:[%s2748_s3 + $0x60] ss:$8 sps:$4 sm:$0xff]  }
 0x160   : > { %v1013_v60 = vpack.c.bf16 %v980_v14, %v979_v47  ;;  %1772 = vmatprep.subr.bf16.mxu1 %v1014_v55  ;;  %v968_v19 = vmax.f32 %v892_v23, 0.0  ;;  %v2027_v54 = vld [vmem:[%s2748_s3 + $0x70] ss:$8 sps:$4 sm:$0xff]   ;;  %v2653_v47 = vpop.permute.xlu1 %1098  ;;  %v2028_v14 = vld [vmem:[%s2750_s5] sm:$0xff]   ;;  %v2658_v55 = vpop.permute.xlu0 %1083 }
 0x161   : > { %1773 = vmatpush3.bf16.msra.mxu1 %v1006_v28  ;;  %v967_v38 = vmax.f32 %v889_v21, 0.0 }
 0x162   : > { %1774 = vmatprep.subr.bf16.mxu1 %v1013_v60 }
 0x163   : > { %v1007_v12 = vpack.c.bf16 %v968_v19, %v967_v38 }
 0x164   : > { %v2660_v53 = vpop.permute.xlu1 %1088  ;;  %v2662_v5 = vpop.permute.xlu0 %1073 }
 0x165   : > { %1775 = vmatpush3.bf16.msra.mxu1 %v1005_v24 }
 0x166   : > { %1776 = vmatprep.subr.bf16.mxu1 %v1012_v50 }
 0x168   : > { %v2664_v28 = vpop.permute.xlu1 %1078  ;;  %v2666_v58 = vpop.permute.xlu0 %1063 }
 0x169   : > { %1777 = vmatpush3.bf16.msra.mxu1 %v1004_v27 }
 0x16a   : > { %1778 = vmatprep.subr.bf16.mxu1 %v1011_v34 }
 0x16c   : > { %v2668_v18 = vpop.permute.xlu1 %1068  ;;  %v2670_v60 = vpop.permute.xlu0 %1053 }
 0x16d   : > { %1779 = vmatpush3.bf16.msra.mxu1 %v1003_v22 }
 0x16e   : > { %1780 = vmatprep.subr.bf16.mxu1 %v1010_v48 }
 0x170   : > { %v2672_v26 = vpop.permute.xlu1 %1058  ;;  %v1044_v56 = vpop.permute.xlu0 %1043 }
 0x171   : > { %1781 = vmatpush3.bf16.msra.mxu1 %v2558_v46  ;;  %v2009_v46 = vld [vmem:[%s2748_s3 + $0x10] ss:$8 sps:$4 sm:$0xff]  }
 0x172   : > { %1782 = vmatprep.subr.bf16.mxu1 %v1009_v37 }
 0x174   : > { %v1049_v57 = vpop.permute.xlu1 %1048  ;;  %v1034_v62 = vpop.permute.xlu0 %1033 }
 0x175   : > { %1783 = vmatpush3.bf16.msra.mxu1 %v2560_v49  ;;  %v2013_v49 = vld [vmem:[%s2748_s3 + $0x34] ss:$8 sps:$4 sm:$0xff]  }
 0x176   : > { %1784 = vmatprep.subr.bf16.mxu1 %v1008_v13 }
 0x178   : > { %v1039_v0 = vpop.permute.xlu1 %1038 }
 0x179   : > { %1785 = vmatpush3.bf16.msra.mxu1 %v2554_v32  ;;  %v2010_v32 = vld [vmem:[%s2748_s3 + $0x24] ss:$8 sps:$4 sm:$0xff]  }
 0x17a   : > { %1786 = vmatprep.subr.bf16.mxu1 %v1007_v12 }
 0x17d   : > { %1787 = vmatpush3.bf16.msra.mxu1 %v2556_v35  ;;  %v2012_v35 = vld [vmem:[%s2748_s3 + $0x20] ss:$8 sps:$4 sm:$0xff]  }
 0x180   : > { %1224 = vmatmul.mubr.bf16.vlgmr.msra.gmra.mxu1 %v2004_v17 }
 0x181   : > { %1231 = vmatprep.mubr.bf16.mxu1 %v2007_v16 }
 0x188   : > { %1232 = vmatmul.mubr.bf16.gmra.mxu1 %v2009_v46 }
 0x189   : > { %1239 = vmatprep.mubr.bf16.mxu1 %v2010_v32 }
 0x190   : > { %1240 = vmatmul.mubr.bf16.gmra.mxu1 %v2012_v35 }
 0x191   : > { %1247 = vmatprep.mubr.bf16.mxu1 %v2013_v49 }
 0x198   : > { %1248 = vmatmul.mubr.bf16.gmra.mxu1 %v2015_v10 }
 0x199   : > { %1255 = vmatprep.mubr.bf16.mxu1 %v2016_v7 }
 0x1a0   : > { %1256 = vmatmul.mubr.bf16.gmra.mxu1 %v2018_v11 }
 0x1a1   : > { %1263 = vmatprep.mubr.bf16.mxu1 %v2019_v39 }
 0x1a8   : > { %1264 = vmatmul.mubr.bf16.gmra.mxu1 %v2021_v40 }
 0x1a9   : > { %1271 = vmatprep.mubr.bf16.mxu1 %v2022_v41 }
 0x1b0   : > { %1272 = vmatmul.mubr.bf16.gmra.mxu1 %v2024_v42 }
 0x1b1   : > { %1279 = vmatprep.mubr.bf16.mxu1 %v2025_v43 }
 0x1b8   : > { %1280 = vmatmul.mubr.bf16.gmra.mxu1 %v2027_v54 }
 0x1b9   : > { %1918 = vmatprep.mubr.bf16.mxu1 %v2028_v14 }
 0x240   : > { %v1788_v29 = vpop.f32.mrf.mxu1 }
 0x242   : > { %v1789_v59 = vpop.f32.mrf.mxu1 }
 0x243   : > { %v1790_v15 = vadd.f32 %v1789_v59, %v1788_v29 }
 0x244   : > { %v1791_v24 = vpop.f32.mrf.mxu1 }
 0x245   : > { %v1226_v30 = vadd.f32 %v1790_v15, %v1034_v62 }
 0x246   : > { %v1792_v50 = vpop.f32.mrf.mxu1 }
 0x247   : > { %v1793_v31 = vadd.f32 %v1792_v50, %v1791_v24  ;;  %v1288_v33 = vmax.f32 %v1226_v30, 0.0 }
 0x248   : > { %v1794_v61 = vpop.f32.mrf.mxu1 }
 0x249   : > { %v1229_v44 = vadd.f32 %v1793_v31, %v1039_v0 }
 0x24a   : > { %v1795_v27 = vpop.f32.mrf.mxu1 }
 0x24b   : > { %v1289_v63 = vmax.f32 %v1229_v44, 0.0  ;;  %v1796_v25 = vadd.f32 %v1795_v27, %v1794_v61 }
 0x24c   : > { %v1797_v34 = vpop.f32.mrf.mxu1 }
 0x24d   : > { %v2674_v2 = vpack.c.bf16 %v1289_v63, %v1288_v33  ;;  %v1234_v4 = vadd.f32 %v1796_v25, %v1044_v56 }
 0x24e   : > { %v1798_v6 = vpop.f32.mrf.mxu1 }
 0x24f   : > { %v1799_v22 = vadd.f32 %v1798_v6, %v1797_v34  ;;  %v1290_v20 = vmax.f32 %v1234_v4, 0.0 }
 0x250   : > { %v1800_v1 = vpop.f32.mrf.mxu1 }
 0x251   : > { %v1237_v48 = vadd.f32 %v1799_v22, %v1049_v57 }
 0x252   : > { %v1801_v3 = vpop.f32.mrf.mxu1 }
 0x253   : > { %v1291_v36 = vmax.f32 %v1237_v48, 0.0 }
 0x254   : > { %v1803_v9 = vpop.f32.mrf.mxu1 }
 0x255   : > { %v2676_v23 = vpack.c.bf16 %v1291_v36, %v1290_v20 }
 0x256   : > { %v1804_v37 = vpop.f32.mrf.mxu1 }
 0x258   : > { %v1806_v8 = vpop.f32.mrf.mxu1 }
 0x25a   : > { %v1807_v21 = vpop.f32.mrf.mxu1 }
 0x25c   : > { %v1809_v13 = vpop.f32.mrf.mxu1 }
 0x25e   : > { %v1810_v19 = vpop.f32.mrf.mxu1 }
 0x260   : > { %v1812_v38 = vpop.f32.mrf.mxu1 }
 0x262   : > { %v1813_v12 = vpop.f32.mrf.mxu1 }
 0x263   : > { %v1814_v27 = vadd.f32 %v1813_v12, %v1812_v38 }
 0x264   : > { %v1815_v17 = vpop.f32.mrf.mxu1 }
 0x266   : > { %v1816_v16 = vpop.f32.mrf.mxu1 }
 0x267   : > { %v1817_v30 = vadd.f32 %v1816_v16, %v1815_v17 }
 0x268   : > { %v1818_v46 = vpop.f32.mrf.mxu1 }
 0x26a   : > { %v1819_v32 = vpop.f32.mrf.mxu1 }
 0x26b   : > { %v1820_v24 = vadd.f32 %v1819_v32, %v1818_v46 }
 0x26c   : > { %v1821_v35 = vpop.f32.mrf.mxu1 }
 0x26d   : > { %v1266_v33 = vadd.f32 %v1820_v24, %v2658_v55  ;;  %v1802_v55 = vadd.f32 %v1801_v3, %v1800_v1  ;;  %v2032_v1 = vld [vmem:[%s2752_s7] sm:$0xff]   ;;  %v1366_v3 = vpop.permute.xlu1 %1365 }
 0x26e   : > { %v1822_v49 = vpop.f32.mrf.mxu1 }
 0x26f   : > { %v1823_v29 = vadd.f32 %v1822_v49, %v1821_v35  ;;  %v1298_v4 = vmax.f32 %v1266_v33, 0.0 }
 0x270   : > { %v1824_v10 = vpop.f32.mrf.mxu1 }
 0x271   : > { %v1269_v31 = vadd.f32 %v1823_v29, %v2660_v53  ;;  %v1805_v53 = vadd.f32 %v1804_v37, %v1803_v9  ;;  %v1356_v16 = vpop.permute.xlu1 %1355 }
 0x272   : > { %v1825_v7 = vpop.f32.mrf.mxu1 }
 0x273   : > { %v1826_v14 = vadd.f32 %v1825_v7, %v1824_v10  ;;  %v1299_v34 = vmax.f32 %v1269_v31, 0.0 }
 0x274   : > { %v1827_v11 = vpop.f32.mrf.mxu1 }
 0x275   : > { %v1274_v62 = vadd.f32 %v1826_v14, %v2651_v52  ;;  %v1808_v52 = vadd.f32 %v1807_v21, %v1806_v8  ;;  %v1317_v20 = vpack.c.bf16 %v1299_v34, %v1298_v4  ;;  %v1346_v7 = vpop.permute.xlu1 %1345 }
 0x276   : > { %v1828_v39 = vpop.f32.mrf.mxu1 }
 0x277   : > { %v1829_v42 = vadd.f32 %v1828_v39, %v1827_v11  ;;  %v1300_v63 = vmax.f32 %v1274_v62, 0.0  ;;  %v1250_v36 = vadd.f32 %v1808_v52, %v2666_v58  ;;  %v2029_v58 = vld [vmem:[%s2750_s5 + $0x8] sm:$0xff]  }
 0x278   : > { %v1830_v40 = vpop.f32.mrf.mxu1 }
 0x279   : > { %v1277_v57 = vadd.f32 %v1829_v42, %v2653_v47  ;;  %v1811_v47 = vadd.f32 %v1810_v19, %v1809_v13  ;;  %v1294_v8 = vmax.f32 %v1250_v36, 0.0  ;;  %v1336_v24 = vpop.permute.xlu1 %1335 }
 0x27a   : > { %v1831_v41 = vpop.f32.mrf.mxu1 }
 0x27b   : > { %v1832_v43 = vadd.f32 %v1831_v41, %v1830_v40  ;;  %v1301_v0 = vmax.f32 %v1277_v57, 0.0  ;;  %v1253_v22 = vadd.f32 %v1811_v47, %v2668_v18 }
 0x27c   : > { %v1833_v54 = vpop.f32.mrf.mxu1 }
 0x27d   : > { %v1282_v59 = vadd.f32 %v1832_v43, %v2647_v45  ;;  %v1261_v45 = vadd.f32 %v1817_v30, %v2664_v28  ;;  %v1318_v6 = vpack.c.bf16 %v1301_v0, %v1300_v63  ;;  %v1245_v28 = vadd.f32 %v1805_v53, %v2672_v26  ;;  %v2031_v26 = vld [vmem:[%s2750_s5 + $0x18] sm:$0xff]  }
 0x27e   : > { %v1834_v56 = vpop.f32.mrf.mxu1  ;;  %v1295_v19 = vmax.f32 %v1253_v22, 0.0 }
 0x27f   : > { %v1835_v15 = vadd.f32 %v1834_v56, %v1833_v54  ;;  %v1302_v61 = vmax.f32 %v1282_v59, 0.0  ;;  %v1297_v48 = vmax.f32 %v1261_v45, 0.0  ;;  %v1293_v9 = vmax.f32 %v1245_v28, 0.0  ;;  %v1485_v45 = vpop.permute.xlu1 %1484 }
 0x280   : > { %v1315_v37 = vpack.c.bf16 %v1295_v19, %v1294_v8 }
 0x281   : > { %v1285_v50 = vadd.f32 %v1835_v15, %v2649_v51  ;;  %v1258_v51 = vadd.f32 %v1814_v27, %v2662_v5  ;;  %v1242_v5 = vadd.f32 %v1802_v55, %v2670_v60  ;;  %v2030_v60 = vld [vmem:[%s2750_s5 + $0x10] sm:$0xff]  }
 0x283   : > { %v1303_v44 = vmax.f32 %v1285_v50, 0.0  ;;  %v1296_v13 = vmax.f32 %v1258_v51, 0.0  ;;  %v1292_v18 = vmax.f32 %v1242_v5, 0.0  ;;  %v1495_v52 = vpop.permute.xlu1 %1494 }
 0x285   : > { %v1319_v25 = vpack.c.bf16 %v1303_v44, %v1302_v61  ;;  %v1316_v38 = vpack.c.bf16 %v1297_v48, %v1296_v13  ;;  %v1314_v21 = vpack.c.bf16 %v1293_v9, %v1292_v18 }
 0x287   : > { %1902 = vmatprep.subr.bf16.mxu1 %v1319_v25  ;;  %v1578_v28 = vpop.permute.xlu1 %1577 }
 0x288   : > { %1903 = vmatpush3.bf16.msra.mxu1 %v1319_v25  ;;  %v2033_v25 = vld [vmem:[%s2752_s7 + $0x8] sm:$0xff]  }
 0x289   : > { %1904 = vmatprep.subr.bf16.mxu1 %v1318_v6 }
 0x28c   : > { %1905 = vmatpush3.bf16.msra.mxu1 %v1318_v6 }
 0x28d   : > { %1906 = vmatprep.subr.bf16.mxu1 %v1317_v20 }
 0x290   : > { %1907 = vmatpush3.bf16.msra.mxu1 %v1317_v20 }
 0x291   : > { %1908 = vmatprep.subr.bf16.mxu1 %v1316_v38 }
 0x294   : > { %1909 = vmatpush3.bf16.msra.mxu1 %v1316_v38 }
 0x295   : > { %1910 = vmatprep.subr.bf16.mxu1 %v1315_v37 }
 0x298   : > { %1911 = vmatpush3.bf16.msra.mxu1 %v1315_v37 }
 0x299   : > { %1912 = vmatprep.subr.bf16.mxu1 %v1314_v21 }
 0x29c   : > { %1913 = vmatpush3.bf16.msra.mxu1 %v1314_v21 }
 0x29d   : > { %1914 = vmatprep.subr.bf16.mxu1 %v2676_v23 }
 0x2a0   : > { %1915 = vmatpush3.bf16.msra.mxu1 %v2676_v23 }
 0x2a1   : > { %1916 = vmatprep.subr.bf16.mxu1 %v2674_v2 }
 0x2a4   : > { %1917 = vmatpush3.bf16.msra.mxu1 %v2674_v2  ;;  %v1361_v2 = vpop.permute.xlu0 %1360 }
 0x2a7   : > { %1919 = vmatmul.mubr.bf16.vlgmr.msra.gmra.mxu1 %v2029_v58  ;;  %v1588_v58 = vpop.permute.xlu1 %1587 }
 0x2a8   : > { %1922 = vmatprep.mubr.bf16.mxu1 %v2030_v60  ;;  %v1351_v32 = vpop.permute.xlu0 %1350 }
 0x2ac   : > { %v1341_v41 = vpop.permute.xlu0 %1340 }
 0x2af   : > { %1923 = vmatmul.mubr.bf16.gmra.mxu1 %v2031_v26 }
 0x2b0   : > { %1934 = vmatprep.mubr.msk.bf16.mxu1 %vm717_vm0, %v2032_v1  ;;  %v1331_v31 = vpop.permute.xlu0 %1330  ;;  %v1609_v1 = vlaneseq }
 0x2b4   : > { %v1480_v47 = vpop.permute.xlu0 %1479 }
 0x2b8   : > { %v1490_v34 = vpop.permute.xlu0 %1489 }
 0x2bc   : > { %v1573_v48 = vpop.permute.xlu0 %1572 }
 0x2c0   : > { %v1583_v37 = vpop.permute.xlu0 %1582 }
 0x367   : > { %v1920_v23 = vpop.f32.mrf.mxu1 }
 0x368   : > { %v1435_v29 = vadd.f32 %v1920_v23, %v1341_v41 }
 0x369   : > { %v1426_v12 = vpop.f32.mrf.mxu1 }
 0x36a   : > { %v1459_v0 = vmax.f32 %v1435_v29, 0.0  ;;  %v1427_v61 = vadd.f32 %v1426_v12, %v1331_v31 }
 0x36b   : > { %v1921_v17 = vpop.f32.mrf.mxu1 }
 0x36c   : > { %v1438_v43 = vadd.f32 %v1921_v17, %v1346_v7  ;;  %v1457_v33 = vmax.f32 %v1427_v61, 0.0 }
 0x36d   : > { %v1429_v46 = vpop.f32.mrf.mxu1 }
 0x36e   : > { %v1460_v62 = vmax.f32 %v1438_v43, 0.0  ;;  %v1430_v50 = vadd.f32 %v1429_v46, %v1336_v24 }
 0x36f   : > { %v1924_v35 = vpop.f32.mrf.mxu1 }
 0x370   : > { %v1451_v10 = vadd.f32 %v1924_v35, %v1361_v2  ;;  %v1470_v44 = vpack.c.bf16 %v1460_v62, %v1459_v0  ;;  %v1458_v27 = vmax.f32 %v1430_v50, 0.0  ;;  %v1610_v2 = vshrl.u32 %v1609_v1, 7 }
 0x371   : > { %v1442_v49 = vpop.f32.mrf.mxu1 }
 0x372   : > { %v1443_v39 = vadd.f32 %v1442_v49, %v1351_v32  ;;  %v1463_v54 = vmax.f32 %v1451_v10, 0.0  ;;  %v1469_v63 = vpack.c.bf16 %v1458_v27, %v1457_v33  ;;  %v1607_v32 = vpop.permute.xlu0 %1606 }
 0x373   : > { %v1925_v11 = vpop.f32.mrf.mxu1 }
 0x374   : > { %v1454_v40 = vadd.f32 %v1925_v11, %v1366_v3  ;;  %v1461_v57 = vmax.f32 %v1443_v39, 0.0 }
 0x375   : > { %v1445_v42 = vpop.f32.mrf.mxu1 }
 0x376   : > { %v1464_v14 = vmax.f32 %v1454_v40, 0.0  ;;  %v1446_v56 = vadd.f32 %v1445_v42, %v1356_v16  ;;  %v1611_v16 = vsub.s32 0, %v1610_v2 }
 0x378   : > { %v1472_v59 = vpack.c.bf16 %v1464_v14, %v1463_v54  ;;  %v1462_v15 = vmax.f32 %v1446_v56, 0.0  ;;  %v1612_v49 = vrot.slane %v1607_v32, %v1611_v16 }
 0x37a   : > { %v1471_v30 = vpack.c.bf16 %v1462_v15, %v1461_v57  ;;  %1926 = vmatprep.subr.bf16.mxu1 %v1472_v59 }
 0x37b   : > { %1927 = vmatpush3.bf16.msra.mxu1 %v1472_v59 }
 0x37c   : > { %1928 = vmatprep.subr.bf16.mxu1 %v1471_v30 }
 0x37f   : > { %1929 = vmatpush3.bf16.msra.mxu1 %v1471_v30 }
 0x380   : > { %1930 = vmatprep.subr.bf16.mxu1 %v1470_v44 }
 0x383   : > { %1931 = vmatpush3.bf16.msra.mxu1 %v1470_v44 }
 0x384   : > { %1932 = vmatprep.subr.bf16.mxu1 %v1469_v63 }
 0x387   : > { %1933 = vmatpush3.bf16.msra.mxu1 %v1469_v63 }
 0x38a   : > { %1935 = vmatmul.mubr.msk.bf16.vlgmr.msra.gmra.mxu1 %vm717_vm0, %v2033_v25 }
 0x44a   : > { %v1936_v6 = vpop.f32.mrf.mxu1 }
 0x44b   : > { %v1556_v22 = vadd.f32 %v1936_v6, %v1490_v34 }
 0x44c   : > { %v1547_v51 = vpop.f32.mrf.mxu1 }
 0x44d   : > { %v1548_v4 = vadd.f32 %v1547_v51, %v1480_v47  ;;  %v1564_v19 = vmax.f32 %v1556_v22, 0.0 }
 0x44e   : > { %v1937_v53 = vpop.f32.mrf.mxu1 }
 0x44f   : > { %v1562_v55 = vmax.f32 %v1548_v4, 0.0  ;;  %v1559_v36 = vadd.f32 %v1937_v53, %v1495_v52  ;;  %v1592_v18 = vmul.f32 %v1583_v37, %v1564_v19 }
 0x450   : > { %v1550_v20 = vpop.f32.mrf.mxu1 }
 0x451   : > { %v1551_v13 = vadd.f32 %v1550_v20, %v1485_v45  ;;  %v1590_v5 = vmul.f32 %v1573_v48, %v1562_v55  ;;  %v1565_v8 = vmax.f32 %v1559_v36, 0.0 }
 0x453   : > { %v1563_v38 = vmax.f32 %v1551_v13, 0.0  ;;  %v1593_v60 = vmul.f32 %v1588_v58, %v1565_v8 }
 0x455   : > { %v1591_v9 = vmul.f32 %v1578_v28, %v1563_v38 }
 0x457   : > { %v1594_v21 = vadd.f32 %v1591_v9, %v1590_v5 }
 0x459   : > { %v1595_v26 = vadd.f32 %v1594_v21, %v1592_v18 }
 0x45b   : > { %v1596_v3 = vadd.f32 %v1595_v26, %v1593_v60 }
 0x45d   : > { %v1597_v23 = vrot.slane %v1596_v3, 4 }
 0x45f   : > { %v1598_v12 = vadd.f32 %v1597_v23, %v1596_v3 }
 0x461   : > { %v1599_v17 = vrot.slane %v1598_v12, 2 }
 0x463   : > { %v1600_v46 = vadd.f32 %v1599_v17, %v1598_v12 }
 0x465   : > { %v1601_v35 = vrot.slane %v1600_v46, 1 }
 0x467   : > { %v1602_v10 = vadd.f32 %v1601_v35, %v1600_v46 }
 0x469   : > { %v1613_v7 = vadd.f32 %v1612_v49, %v1602_v10 }
 0x46b   : > { %1614 = vst [vmem:[%s381_s16] sm:$0x1] %v1613_v7 }
 0x46c   : > { %2047 = shalt.err (!%p2044_p3)
}
 0x46d   : > { %s2048_s0 = scalar_lea.hbm %s1626_s25, 16  ;;  %s2052_s16 = scalar_lea.hbm %s2756_s11, 32 }
 0x46e   : > { %p2049_p4 = scmp.ne.s32.totalorder %s1626_s25, %s2048_s0  ;;  %p2053_p9 = scmp.lt.s32.totalorder %s1626_s25, %s2756_s11 }
 0x46f   : > { %p2054_p10 = scmp.lt.s32.totalorder %s2052_s16, %s2048_s0 }
 0x470   : > { %p2050_p7 = pnand %p2049_p4, %p2196_p5 }
 0x471   : > { %p2055_p11 = por %p2054_p10, %p2053_p9 }
 0x472   : > { %p2051_p8 = pneg %p2050_p7 }
 0x474   : > { %p2056_p12 = pnand %p2055_p11, %p2051_p8 }
 0x476   : > { %2059 = shalt.err (!%p2056_p12)
}
 0x477   : > { %1946 = dma.vmem_to_hbm [thread:$0]  (%p2196_p5), %s1629_s10, 16, %s1626_s25, %s1616_s26  }
 0x478 PF: > { %p1952_p13 = scmp.ge.s32.totalorder %s2094_s22, 2  ;;  %s1640_s12 = sand.u32 1, %s2082_s19  }
 0x479   : > { %s1641_s13 = scalar_lea.sflag [#allocation4], %s1640_s12 }
 0x47a   : > { %p1949_p0 = pnand %p1952_p13, %p2200_p6 }
 0x47c   : > { %p1950_p1 = pneg %p1949_p0 }
 0x47e   : > { %2077 = dma.done.wait (%p1950_p1), %s1641_s13, 16  }
 0x47f   : > { %2079 = vsyncadd (%p1950_p1), %s1641_s13, 4294967280  ;;  %p23_p2 = scmp.ge.s32.totalorder %s2184_s24, 4   ;;  %s2761_s19 = smov %s2086_s20 }
 0x480   : > { %s2762_s20 = smov %s2090_s21  ;;  %s2763_s21 = smov %s2194_s27 }
 0x481   : > { %s2764_s22 = smov %s2184_s24  ;;  %25 = sbr.rel (!%p23_p2) target bundleno = 6 (0x6), region = 99 }
 0x486   :  { %1645 = vsyncpa [#allocation4], 1 }
 0x487   :  { %1647 = vsyncpa [#allocation4 + $0x1], 1 }

</bundles_post_ra>
